<compile_context>
chip_gen: v6e
topology: v6e:2x2x1
jax: 0.10.0
libtpu: 0.0.40
codegen_flags: <defaults>
</compile_context>

<pallas_src>
import jax
import jax.numpy as jnp
from jax.experimental import pallas as pl
from jax.experimental.pallas import tpu as pltpu


def _ceil_to(x: int, q: int) -> int:
    return -(-x // q) * q


def _pick_tile(extent: int, quantum: int, target: int) -> int:
    """Largest multiple of `quantum` that divides `extent` and is <= target.

    Falls back to the full extent (always a legal BlockSpec dim) when the
    extent is small or not divisible by the hardware quantum.
    """
    if extent <= target:
        return extent
    if extent % quantum != 0:
        return extent
    cand = (min(target, extent) // quantum) * quantum
    while cand >= quantum:
        if extent % cand == 0:
            return cand
        cand -= quantum
    return extent


def _make_kernel(g: int):
    def kernel(x_ref, o_ref):
        # x_ref: (1, TC, G, THW) VMEM tile; o_ref: (1, TC, THW).
        # Unrolled max over lane-dense (TC, THW) slices: every operand is a
        # full sublane/lane-dense tile -> pure VPU vmax (G is tiny & static).
        acc = x_ref[0, :, 0, :]
        for gi in range(1, g):
            acc = jnp.maximum(acc, x_ref[0, :, gi, :])
        o_ref[0, :, :] = acc

    return kernel


def max_group_pooling(x: jax.Array, channel_per_group: int = 2) -> jax.Array:
    """Equivalent of MaxGroupPooling.forward for NCHW input x."""
    g = int(channel_per_group)
    if g == 1:
        return x

    b, c, h, w = x.shape
    assert c % g == 0, "channels must be divisible by channel_per_group"
    c_out = c // g
    hw = h * w

    # Pure view: (b, c, h, w) -> (b, c_out, G, h*w); groups are consecutive
    # channels, matching the PyTorch .view(b, c//G, G, h, w) semantics.
    x_r = x.reshape(b, c_out, g, hw)

    itemsize = jnp.dtype(x.dtype).itemsize
    lane_q = 128
    sub_q = max(8, 32 // itemsize)  # 8 (fp32) / 16 (bf16) / 32 (int8)

    # Lane tile: multiple of 128 up to 2048 (or full hw when not divisible).
    thw = _pick_tile(hw, lane_q, 2048)

    # c_out tile: multiple of the sublane quantum, sized so the (worst-case
    # sublane-padded) input block stays around <= 2 MiB per buffer.
    padded_g = _ceil_to(g, sub_q)
    row_bytes = padded_g * _ceil_to(thw, lane_q) * itemsize
    tc_target = max(sub_q, ((2 << 20) // max(1, row_bytes)) // sub_q * sub_q)
    tc = _pick_tile(c_out, sub_q, tc_target)

    grid = (b, c_out // tc, hw // thw)

    # VMEM budget: only raise the scoped limit if the (double-buffered) blocks
    # need it; cap well below v7x's 64 MiB physical VMEM.
    in_block_bytes = tc * padded_g * _ceil_to(thw, lane_q) * itemsize
    out_block_bytes = _ceil_to(tc, sub_q) * _ceil_to(thw, lane_q) * itemsize
    needed = 2 * (in_block_bytes + out_block_bytes)
    vmem_limit = None
    if needed > (12 << 20):
        vmem_limit = int(min(needed + (8 << 20), 56 << 20))

    out = pl.pallas_call(
        _make_kernel(g),
        out_shape=jax.ShapeDtypeStruct((b, c_out, hw), x.dtype),
        grid=grid,
        in_specs=[
            pl.BlockSpec((1, tc, g, thw), lambda i, ci, hi: (i, ci, 0, hi)),
        ],
        out_specs=pl.BlockSpec((1, tc, thw), lambda i, ci, hi: (i, ci, hi)),
        compiler_params=pltpu.CompilerParams(
            # All grid axes independent (no cross-step reduction) -> parallel;
            # on v7x this shards across the 2 TensorCores.
            dimension_semantics=("parallel", "parallel", "parallel"),
            vmem_limit_bytes=vmem_limit,
        ),
    )(x_r)

    return out.reshape(b, c_out, h, w)


def _max_group_pooling_ref(x: jax.Array, g: int) -> jax.Array:
    if g == 1:
        return x
    b, c, h, w = x.shape
    return jnp.max(x.reshape(b, c // g, g, h, w), axis=2)


if __name__ == "__main__":
    key = jax.random.PRNGKey(0)
    k0, k1 = jax.random.split(key)

    # Primary check: matches the module's typical small-shape usage.
    b, c, h, w = 2, 4, 16, 16
    g = 2
    x = jax.random.normal(k0, (b, c, h, w), dtype=jnp.float32)
    y = jax.block_until_ready(max_group_pooling(x, channel_per_group=g))
    y_ref = _max_group_pooling_ref(x, g)
    assert y.shape == (b, c // g, h, w)
    assert jnp.array_equal(y, y_ref), "mismatch vs reference (fp32, g=2)"

    # Second check: larger group, bf16, exercises the lane/sublane tiling path.
    b2, c2, h2, w2, g2 = 2, 32, 8, 16, 4
    x2 = jax.random.normal(k1, (b2, c2, h2, w2), dtype=jnp.bfloat16)
    y2 = jax.block_until_ready(max_group_pooling(x2, channel_per_group=g2))
    y2_ref = _max_group_pooling_ref(x2, g2)
    assert y2.shape == (b2, c2 // g2, h2, w2)
    assert jnp.array_equal(y2, y2_ref), "mismatch vs reference (bf16, g=4)"

    print("KERNEL_OK")
</pallas_src>

<mosaic_0001>
module attributes {stable_mosaic.version = 11 : i64} {
  func.func @kernel(%arg0: i32, %arg1: i32, %arg2: i32, %arg3: memref<1x2x2x256xf32, #tpu.memory_space<vmem>>, %arg4: memref<1x2x256xf32, #tpu.memory_space<vmem>>) attributes {dimension_semantics = [#tpu.dimension_semantics<parallel>, #tpu.dimension_semantics<parallel>, #tpu.dimension_semantics<parallel>], iteration_bounds = array<i64: 2, 1, 1>, scalar_prefetch = 0 : i64, scratch_operands = 0 : i64, tpu.core_type = #tpu.core_type<tc>, window_params = [{transform_indices = @transform_0, window_bounds = array<i64: 1, 2, 2, 256>}, {transform_indices = @transform_1, window_bounds = array<i64: 1, 2, 256>}]} {
    %c0 = arith.constant 0 : index
    %c0_0 = arith.constant 0 : index
    %c0_1 = arith.constant 0 : index
    %c0_2 = arith.constant 0 : index
    %0 = vector.load %arg3[%c0, %c0_0, %c0_1, %c0_2] : memref<1x2x2x256xf32, #tpu.memory_space<vmem>>, vector<1x2x1x256xf32>
    %1 = vector.shape_cast %0 : vector<1x2x1x256xf32> to vector<2x256xf32>
    %c0_3 = arith.constant 0 : index
    %c0_4 = arith.constant 0 : index
    %c1 = arith.constant 1 : index
    %c0_5 = arith.constant 0 : index
    %2 = vector.load %arg3[%c0_3, %c0_4, %c1, %c0_5] : memref<1x2x2x256xf32, #tpu.memory_space<vmem>>, vector<1x2x1x256xf32>
    %3 = vector.shape_cast %2 : vector<1x2x1x256xf32> to vector<2x256xf32>
    %4 = arith.maximumf %1, %3 : vector<2x256xf32>
    %c0_6 = arith.constant 0 : index
    %c0_7 = arith.constant 0 : index
    %c0_8 = arith.constant 0 : index
    %5 = vector.load %arg4[%c0_6, %c0_7, %c0_8] : memref<1x2x256xf32, #tpu.memory_space<vmem>>, vector<1x2x256xf32>
    %6 = vector.shape_cast %5 : vector<1x2x256xf32> to vector<2x256xf32>
    %7 = vector.shape_cast %4 : vector<2x256xf32> to vector<1x2x256xf32>
    tpu.vector_store %arg4[%c0_6, %c0_7, %c0_8], %7 {strides = array<i32>} : memref<1x2x256xf32, #tpu.memory_space<vmem>>, vector<1x2x256xf32>,
    return
  }
  func.func @transform_0(%arg0: i32, %arg1: i32, %arg2: i32) -> (i32, i32, i32, i32) {
    %c0_i32 = arith.constant 0 : i32
    %c0_i32_0 = arith.constant 0 : i32
    return %arg0, %arg1, %c0_i32, %arg2 : i32, i32, i32, i32
  }
  func.func @transform_1(%arg0: i32, %arg1: i32, %arg2: i32) -> (i32, i32, i32) {
    %c0_i32 = arith.constant 0 : i32
    return %arg0, %arg1, %arg2 : i32, i32, i32
  }
}

</mosaic_0001>

<bundles_post_ra>
// kernel: tpu_custom_call.1
= control target key start
LH: loop header
LB: loop body
LE: loop exit
PB: predicated region body
PF: predicated region fallthrough
CT: control target
= control target key end

     0   :  { %6 = vsyncpa [#allocation3], 0  ;;  %s643_s0 = inlined_call_operand.hbm [shape: f32[2,2,2,256], index: 0, kind: input, shape index: {}]   ;;  %s644_s1 = inlined_call_operand.hbm [shape: f32[2,2,256], index: 1, kind: output, shape index: {}]  }
   0x1   :  { %8 = vsyncpa [#allocation3 + $0x1], 0 }
   0x2   :  { %9 = vsyncpa [#allocation4], 0 }
   0x3   :  { %11 = vsyncpa [#allocation4 + $0x1], 0  ;;  %s510_s6 = smov 0   ;;  %s512_s7 = smov 0  }
   0x4   :  { %s514_s8 = smov 0   ;;  %s516_s9 = smov 0  }
   0x5   :  { %s518_s10 = smov 0   ;;  %s520_s11 = smov 0  }
   0x6 LB: > { %s301_s12 = sadd.s32 4294967295, %s494_s11   ;;  %s302_s13 = sadd.s32 4294967294, %s494_s11   ;;  %s494_s11 = sphi %s520_s11, %s17_s11   ;;  %s490_s10 = sphi %s518_s10, %s655_s10   ;;  %s486_s9 = sphi %s516_s9, %s654_s9   ;;  %s482_s8 = sphi %s514_s8, %s653_s8   ;;  %s478_s7 = sphi %s512_s7, %s652_s7   ;;  %s474_s6 = sphi %s510_s6, %s651_s6  }
   0x7   : > { %s36_s14 = sadd.s32 1, %s490_s10  ;;  %s47_s15 = sadd.s32 1, %s482_s8 }
   0x8   : > { %p38_p0 = scmp.ge.s32.totalorder %s36_s14, 2  ;;  %p54_p1 = scmp.ne.s32.totalorder %s482_s8, %s478_s7 }
   0x9   : > { %p55_p2 = scmp.eq.s32.totalorder %s494_s11, 0  ;;  %p60_p3 = scmp.ne.s32.totalorder %s478_s7, %s474_s6 }
   0xa   : > { %s657_s14 = smov (%p38_p0, %s36_s14), 0  ;;  %p61_p5 = scmp.eq.s32.totalorder %s301_s12, 0 }
   0xb   : > { %p551_p4 = por %p55_p2, %p54_p1  ;;  %s40_s17 = ssub.s32 %s490_s10, %s657_s14 }
   0xc   : > { %p88_p6 = scmp.eq.s32.totalorder %s301_s12, 1  ;;  %p45_p7 = scmp.eq.s32.totalorder %s40_s17, 0 }
   0xd   : > { %p557_p8 = por %p61_p5, %p60_p3  ;;  %p94_p10 = scmp.eq.s32.totalorder %s302_s13, 1 }
   0xe   : > { %p561_p9 = por %p88_p6, %p54_p1  ;;  %p334_p13 = scmp.lt.s32.totalorder %s494_s11, 2 }
   0xf   : > { %s566_s20 = scalar_select %p45_p7, %s482_s8, %s47_s15  }
  0x10   : > { %p568_p11 = por %p94_p10, %p60_p3  ;;  %s114_s22 = sand.u32 1, %s482_s8  }
  0x11   : > { %s305_s23 = sshll.u32 %s114_s22, 3  ;;  %s320_s24 = sshll.u32 %s490_s10, 7 }
  0x12   : > { %s129_s27 = scalar_lea.hbm %s643_s0, %s320_s24  ;;  %s118_s28 = scalar_lea.vmem [#allocation2], %s305_s23 }
  0x13   : > { %s130_s29 = sshll.u32 %s118_s28, 4  ;;  %p581_p0 = pnand %p334_p13, %p551_p4  ;;  %s131_s29 = int_to_ptr.vmem [resolvable:$true] %s130_s29 }
  0x14   : > { %p308_p1 = scmp.ge.s32.totalorder %s494_s11, 1  ;;  %s115_s2 = scalar_lea.sflag [#allocation3], %s114_s22 }
  0x15   : > { %p388_p2 = pneg %p581_p0  ;;  %s399_s3 = scalar_lea.vmem %s131_s29, 128 }
  0x16   : > { %p400_p3 = scmp.ne.s32.totalorder %s131_s29, %s399_s3  ;;  %s496_s4 = smov [#allocation2]  }
  0x17   : > { %s404_s5 = sshll.u32 %s496_s4, 4  ;;  %s405_s5 = int_to_ptr.vmem [resolvable:$false] %s404_s5 }
  0x18   : > { %p402_p5 = pnand %p400_p3, %p388_p2  ;;  %s406_s12 = scalar_lea.vmem %s405_s5, 256 }
  0x19   : > { %p407_p7 = scmp.lt.s32.totalorder %s131_s29, %s405_s5  ;;  %p408_p10 = scmp.lt.s32.totalorder %s406_s12, %s399_s3 }
  0x1a   : > { %p403_p6 = pneg %p402_p5 }
  0x1b   : > { %p409_p12 = por %p408_p10, %p407_p7 }
  0x1d   : > { %p410_p4 = pnand %p409_p12, %p403_p6 }
  0x1f   : > { %413 = shalt.err (!%p410_p4)
}
  0x20   : > { %s497_s13 = smov 64   ;;  %s498_s15 = smov 4  }
  0x21   : > { %329 = dma.hbm_to_vmem [thread:$0]  (!%p581_p0), %s129_s27, 128, %s131_s29, %s115_s2, %s497_s13, %s497_s13, %s498_s15  }
  0x22   : > { %p138_p13 = scmp.lt.s32.totalorder %s494_s11, 3 }
  0x24   : > { %p139_p2 = pnand %p308_p1, %p138_p13 }
  0x25   : > { %s594_s16 = sand.u32 (!%p139_p2), 1, %s478_s7  }
  0x26   : > { %142 = sbr.rel (%p139_p2) target bundleno = 68 (0x44), region = 24  ;;  %s309_s17 = sshll.u32 (!%p139_p2), %s594_s16, 3 }
  0x27   : > { %s145_s22 = scalar_lea.sflag (!%p139_p2), [#allocation3], %s594_s16  ;;  %s148_s23 = scalar_lea.vmem (!%p139_p2), [#allocation2], %s309_s17 }
  0x2b   : > { %465 = dma.done.wait (%p557_p8), %s145_s22, 128  }
  0x2c   : > { %467 = vsyncadd (%p557_p8), %s145_s22, 4294967168  ;;  %s310_s24 = sshll.u32 %s594_s16, 2  ;;  %s321_s27 = sshll.u32 %s486_s9, 6  ;;  %v170_v0 = vld [vmem:[%s148_s23] ss:$2 sm:$0x3] }
  0x2d   : > { %s166_s25 = scalar_lea.vmem [#allocation5], %s310_s24  ;;  %v311_v1 = vld [vmem:[%s148_s23 + $0x4] ss:$2 sm:$0x3]  ;;  %s208_s18 = scalar_lea.hbm %s644_s1, %s321_s27 }
  0x2e   : > { %s210_s26 = sshll.u32 %s166_s25, 4  ;;  %v312_v2 = vld [vmem:[%s148_s23 + $0x1] ss:$2 sm:$0x3]  ;;  %s192_s30 = scalar_lea.sflag [#allocation4], %s594_s16  ;;  %s211_s26 = int_to_ptr.vmem [resolvable:$true] %s210_s26 }
  0x2f   : > { %v313_v3 = vld [vmem:[%s148_s23 + $0x5] ss:$2 sm:$0x3]  ;;  %v177_v4 = vmax.f32 %v170_v0, %v312_v2  ;;  %s414_s2 = scalar_lea.vmem %s211_s26, 64  ;;  %s499_s9 = smov [#allocation5]  }
  0x30   : > { %v178_v5 = vmax.f32 %v311_v1, %v313_v3  ;;  %p415_p8 = scmp.ne.s32.totalorder %s211_s26, %s414_s2  ;;  %s418_s3 = sshll.u32 %s499_s9, 4  ;;  %s419_s3 = int_to_ptr.vmem [resolvable:$false] %s418_s3 }
  0x31   : > { %s420_s4 = scalar_lea.vmem %s419_s3, 128  ;;  %p421_p1 = scmp.lt.s32.totalorder %s211_s26, %s419_s3 }
  0x32   : > { %v181_v6 = vcombine.low %v177_v4, %v178_v5  ;;  %p416_p12 = pnand %p415_p8, %p561_p9  ;;  %p422_p3 = scmp.lt.s32.totalorder %s420_s4, %s414_s2 }
  0x34   : > { %314 = vst.sshfl [vmem:[%s166_s25] sm:$0x33 pattern:$0x75316420] %v181_v6  ;;  %p417_p0 = pneg %p416_p12  ;;  %p423_p5 = por %p422_p3, %p421_p1 }
  0x36   : > { %p424_p6 = pnand %p423_p5, %p417_p0 }
  0x38   : > { %427 = shalt.err (!%p424_p6)
}
  0x39   : > { %s428_s5 = scalar_lea.hbm %s208_s18, 64  ;;  %s432_s15 = scalar_lea.hbm %s644_s1, 128 }
  0x3a   : > { %p429_p7 = scmp.ne.s32.totalorder %s208_s18, %s428_s5  ;;  %p433_p13 = scmp.lt.s32.totalorder %s208_s18, %s644_s1 }
  0x3b   : > { %p434_p2 = scmp.lt.s32.totalorder %s432_s15, %s428_s5 }
  0x3c   : > { %p430_p10 = pnand %p429_p7, %p561_p9 }
  0x3d   : > { %p435_p8 = por %p434_p2, %p433_p13 }
  0x3e   : > { %p431_p4 = pneg %p430_p10 }
  0x40   : > { %p436_p12 = pnand %p435_p8, %p431_p4 }
  0x42   : > { %439 = shalt.err (!%p436_p12)
}
  0x43   : > { %324 = dma.vmem_to_hbm [thread:$0]  (%p561_p9), %s211_s26, 64, %s208_s18, %s192_s30  }
  0x44 PF: > { %s222_s22 = sand.u32 1, %s474_s6   ;;  %p650_p0 = scmp.ge.s32.totalorder %s494_s11, 2 }
  0x45   : > { %s223_s23 = scalar_lea.sflag [#allocation4], %s222_s22 }
  0x46   : > { %p331_p1 = pnand %p650_p0, %p568_p11 }
  0x48   : > { %p332_p3 = pneg %p331_p1 }
  0x4a   : > { %469 = dma.done.wait (%p332_p3), %s223_s23, 64  }
  0x4b   : > { %471 = vsyncadd (%p332_p3), %s223_s23, 4294967232  ;;  %s17_s11 = sadd.s32 1, %s494_s11   ;;  %s651_s6 = smov %s478_s7 }
  0x4c   : > { %p14_p5 = scmp.ge.s32.totalorder %s17_s11, 4   ;;  %s652_s7 = smov %s482_s8 }
  0x4d   : > { %s653_s8 = smov %s566_s20  ;;  %s654_s9 = smov %s490_s10 }
  0x4e   : > { %s655_s10 = smov %s657_s14  ;;  %16 = sbr.rel (!%p14_p5) target bundleno = 6 (0x6), region = 72 }
  0x53   :  { %228 = vsyncpa [#allocation3], 1 }
  0x54   :  { %230 = vsyncpa [#allocation3 + $0x1], 1 }
  0x55   :  { %231 = vsyncpa [#allocation4], 1 }
  0x56   :  { %233 = vsyncpa [#allocation4 + $0x1], 1 }

</bundles_post_ra>
